<compile_context>
chip_gen: v5e
topology: v5e:2x2
jax: 0.10.0
libtpu: 0.0.40
codegen_flags: <defaults>
</compile_context>

<pallas_src>
import functools

import jax
import jax.numpy as jnp
from jax import lax
from jax.experimental import pallas as pl
from jax.experimental.pallas import tpu as pltpu


def _resblock_kernel(x_ref, wc_ref, b0_ref, o_ref, apad_ref, col_ref, *, width):
    # x_ref   : (1, Cin, H*W)        raw input (NCHW, spatial flattened)
    # wc_ref  : (Cout, 10*Cin)       [9 conv_0 taps (tap-major, channel-minor) | conv_s 1x1]
    # b0_ref  : (Cout, 1)            conv_0 bias
    # o_ref   : (1, Cout, H*W)
    # apad_ref: (Cin, H*W + 2*ALIGN) f32 scratch -- flat zero-padded activation
    # col_ref : (10*Cin, H*W)        f32 scratch -- im2col operand (+ raw input for shortcut)
    Cin = x_ref.shape[1]
    HW = x_ref.shape[2]
    W = width
    ALIGN = (apad_ref.shape[1] - HW) // 2      # lane-aligned halo, >= W + 1

    x = x_ref[0].astype(jnp.float32)           # (Cin, HW) raw
    a = jnp.where(x > 0, x, 0.2 * x)           # leaky_relu(x, 0.2) only on the used region

    apad_ref[...] = jnp.zeros_like(apad_ref)
    apad_ref[:, ALIGN:ALIGN + HW] = a          # lane-aligned store (ALIGN % 128 == 0)

    # flat index p = h*W + w ; column masks kill horizontal taps that would wrap across rows
    w_idx = lax.broadcasted_iota(jnp.int32, (Cin, HW), 1) % W
    not_first_col = w_idx > 0
    not_last_col = w_idx < (W - 1)

    # Build im2col: rows [t*Cin, (t+1)*Cin) hold activated tap (dh, dw), t = (dh+1)*3 + (dw+1).
    for kh in range(3):
        for kw in range(3):
            d = (kh - 1) * W + (kw - 1)                       # flat spatial shift
            tap = apad_ref[:, ALIGN + d:ALIGN + d + HW]       # static lane-offset slice
            if kw == 0:
                tap = jnp.where(not_first_col, tap, 0.0)
            elif kw == 2:
                tap = jnp.where(not_last_col, tap, 0.0)
            t = kh * 3 + kw
            col_ref[t * Cin:(t + 1) * Cin, :] = tap
    col_ref[9 * Cin:10 * Cin, :] = x           # raw (un-activated) input for the 1x1 shortcut

    # Single MXU matmul fusing conv_0 (all 9 taps) + learned shortcut, then bias.
    acc = jnp.dot(wc_ref[...], col_ref[...], preferred_element_type=jnp.float32)
    acc = acc + b0_ref[...]                    # (Cout, 1) broadcast over the 256 lanes
    o_ref[0] = acc.astype(o_ref.dtype)


def resnet_block_forward(x_nchw, w0, b0=None, ws=None):
    """x_nchw: (B,Cin,H,W); w0: (Cout,Cin,3,3); b0: (Cout,) or None; ws: (Cout,Cin,1,1) or None.

    ws=None corresponds to fin == fout (identity shortcut), matching ResnetBlock._shortcut.
    """
    B, Cin, H, W = x_nchw.shape
    Cout = w0.shape[0]
    HW = H * W
    ALIGN = ((W + 1 + 127) // 128) * 128       # lane-aligned halo width for the flat pad scratch

    # Weights: (Cout,Cin,3,3) -> (Cout,3,3,Cin) -> (Cout, 9*Cin) tap-major / channel-minor,
    # then append the 1x1 shortcut columns (identity when there is no learned shortcut).
    w0_k = jnp.transpose(w0, (0, 2, 3, 1)).reshape(Cout, 9 * Cin)
    if ws is None:
        ws_k = jnp.eye(Cout, Cin, dtype=w0.dtype)             # x_s = x
    else:
        ws_k = ws[:, :, 0, 0]
    wc = jnp.concatenate([w0_k, ws_k], axis=1).astype(jnp.float32)     # (Cout, 10*Cin)
    b0_arr = jnp.zeros((Cout,), jnp.float32) if b0 is None else b0
    b0_k = b0_arr.reshape(Cout, 1).astype(jnp.float32)

    x_flat = x_nchw.reshape(B, Cin, HW)        # free reshape: no transpose, no HBM pad copy

    # TODO(synk): for real GAN sizes (large H*W / Cin), add a spatial row tile to the grid
    # (grid=(B, H//TH)) with a halo'd index_map and cast inputs/weights to bf16 (keep f32
    # accumulation) so the block fits v7x's 64 MiB VMEM and both of its TensorCores get work;
    # unnecessary at this toy size.
    out_flat = pl.pallas_call(
        functools.partial(_resblock_kernel, width=W),
        out_shape=jax.ShapeDtypeStruct((B, Cout, HW), x_nchw.dtype),
        grid_spec=pltpu.PrefetchScalarGridSpec(
            num_scalar_prefetch=0,
            grid=(B,),
            in_specs=[
                pl.BlockSpec((1, Cin, HW), lambda b: (b, 0, 0)),
                pl.BlockSpec((Cout, 10 * Cin), lambda b: (0, 0)),
                pl.BlockSpec((Cout, 1), lambda b: (0, 0)),
            ],
            out_specs=pl.BlockSpec((1, Cout, HW), lambda b: (b, 0, 0)),
            scratch_shapes=[
                pltpu.VMEM((Cin, HW + 2 * ALIGN), jnp.float32),
                pltpu.VMEM((10 * Cin, HW), jnp.float32),
            ],
        ),
        compiler_params=pltpu.CompilerParams(
            dimension_semantics=("parallel",)),
    )(x_flat, wc, b0_k)

    return out_flat.reshape(B, Cout, H, W)     # free reshape back to NCHW


def _reference_forward(x_nchw, w0, b0, ws):
    """Pure-JAX reference using lax.conv_general_dilated (NCHW)."""
    a = jnp.where(x_nchw > 0, x_nchw, 0.2 * x_nchw)
    dx = lax.conv_general_dilated(
        a, w0, window_strides=(1, 1), padding=((1, 1), (1, 1)),
        dimension_numbers=("NCHW", "OIHW", "NCHW"))
    dx = dx + b0.reshape(1, -1, 1, 1)
    x_s = lax.conv_general_dilated(
        x_nchw, ws, window_strides=(1, 1), padding=((0, 0), (0, 0)),
        dimension_numbers=("NCHW", "OIHW", "NCHW"))
    return x_s + dx


if __name__ == "__main__":
    # ResnetBlock(fin=4, fout=8) -> learned_shortcut=True.
    B, Cin, Cout, H, W = 2, 4, 8, 16, 16

    key = jax.random.PRNGKey(0)
    kx, kw0, kb0, kws = jax.random.split(key, 4)
    x = jax.random.normal(kx, (B, Cin, H, W), dtype=jnp.float32)
    w0 = 0.1 * jax.random.normal(kw0, (Cout, Cin, 3, 3), dtype=jnp.float32)   # conv_0.weight
    b0 = 0.1 * jax.random.normal(kb0, (Cout,), dtype=jnp.float32)             # conv_0.bias
    ws = 0.1 * jax.random.normal(kws, (Cout, Cin, 1, 1), dtype=jnp.float32)   # conv_s.weight

    out = jax.block_until_ready(resnet_block_forward(x, w0, b0, ws))
    ref = jax.block_until_ready(_reference_forward(x, w0, b0, ws))

    assert out.shape == (B, Cout, H, W), out.shape
    err = float(jnp.max(jnp.abs(out - ref)))
    assert jnp.allclose(out, ref, atol=1e-4, rtol=1e-4), err
    print("KERNEL_OK")
</pallas_src>

<mosaic_0001>
module attributes {stable_mosaic.version = 11 : i64} {
  func.func @_resblock_kernel(%arg0: i32, %arg1: memref<1x4x256xf32, #tpu.memory_space<vmem>>, %arg2: memref<8x40xf32, #tpu.memory_space<vmem>>, %arg3: memref<8x1xf32, #tpu.memory_space<vmem>>, %arg4: memref<1x8x256xf32, #tpu.memory_space<vmem>>, %arg5: memref<4x512xf32, #tpu.memory_space<vmem>>, %arg6: memref<40x256xf32, #tpu.memory_space<vmem>>) attributes {dimension_semantics = [#tpu.dimension_semantics<parallel>], iteration_bounds = array<i64: 2>, scalar_prefetch = 0 : i64, scratch_operands = 2 : i64, tpu.core_type = #tpu.core_type<tc>, window_params = [{transform_indices = @transform_0, window_bounds = array<i64: 1, 4, 256>}, {pipeline_mode = #tpu.pipeline_mode<synchronous>, transform_indices = @transform_1, window_bounds = array<i64: 8, 40>}, {pipeline_mode = #tpu.pipeline_mode<synchronous>, transform_indices = @transform_2, window_bounds = array<i64: 8, 1>}, {transform_indices = @transform_3, window_bounds = array<i64: 1, 8, 256>}]} {
    %c0 = arith.constant 0 : index
    %c0_0 = arith.constant 0 : index
    %c0_1 = arith.constant 0 : index
    %0 = vector.load %arg1[%c0, %c0_0, %c0_1] : memref<1x4x256xf32, #tpu.memory_space<vmem>>, vector<1x4x256xf32>
    %1 = vector.shape_cast %0 : vector<1x4x256xf32> to vector<4x256xf32>
    %cst = arith.constant 0.000000e+00 : f32
    %2 = vector.broadcast %cst : f32 to vector<4x256xf32>
    %3 = arith.cmpf ogt, %1, %2 : vector<4x256xf32>
    %cst_2 = arith.constant 2.000000e-01 : f32
    %4 = vector.broadcast %cst_2 : f32 to vector<4x256xf32>
    %5 = arith.mulf %4, %1 : vector<4x256xf32>
    %6 = arith.select %3, %1, %5 : vector<4x256xi1>, vector<4x256xf32>
    %cst_3 = arith.constant 0.000000e+00 : f32
    %7 = vector.broadcast %cst_3 : f32 to vector<4x512xf32>
    %c0_4 = arith.constant 0 : index
    %c0_5 = arith.constant 0 : index
    %8 = vector.load %arg5[%c0_4, %c0_5] : memref<4x512xf32, #tpu.memory_space<vmem>>, vector<4x512xf32>
    tpu.vector_store %arg5[%c0_4, %c0_5], %7 {strides = array<i32>} : memref<4x512xf32, #tpu.memory_space<vmem>>, vector<4x512xf32>,
    %c0_6 = arith.constant 0 : index
    %c128 = arith.constant 128 : index
    %9 = vector.load %arg5[%c0_6, %c128] : memref<4x512xf32, #tpu.memory_space<vmem>>, vector<4x256xf32>
    tpu.vector_store %arg5[%c0_6, %c128], %6 {strides = array<i32>} : memref<4x512xf32, #tpu.memory_space<vmem>>, vector<4x256xf32>,
    %10 = tpu.iota {dimensions = array<i32: 1>} : vector<4x256xi32>
    %c16_i32 = arith.constant 16 : i32
    %c0_i32 = arith.constant 0 : i32
    %11 = arith.cmpi eq, %c16_i32, %c0_i32 : i32
    %c1_i32 = arith.constant 1 : i32
    %12 = arith.select %11, %c1_i32, %c16_i32 : i32
    %13 = vector.broadcast %12 : i32 to vector<4x256xi32>
    %14 = arith.remsi %10, %13 : vector<4x256xi32>
    %c0_i32_7 = arith.constant 0 : i32
    %15 = vector.broadcast %c0_i32_7 : i32 to vector<4x256xi32>
    %16 = arith.cmpi ne, %14, %15 : vector<4x256xi32>
    %c0_i32_8 = arith.constant 0 : i32
    %17 = vector.broadcast %c0_i32_8 : i32 to vector<4x256xi32>
    %18 = arith.cmpi slt, %14, %17 : vector<4x256xi32>
    %c0_i32_9 = arith.constant 0 : i32
    %19 = arith.cmpi slt, %12, %c0_i32_9 : i32
    %20 = vector.broadcast %19 : i1 to vector<4x256xi1>
    %21 = vector.broadcast %20 : vector<4x256xi1> to vector<4x256xi1>
    %22 = arith.xori %18, %21 : vector<4x256xi1>
    %23 = arith.andi %22, %16 : vector<4x256xi1>
    %24 = vector.broadcast %12 : i32 to vector<4x256xi32>
    %25 = arith.addi %14, %24 : vector<4x256xi32>
    %26 = arith.select %23, %25, %14 : vector<4x256xi1>, vector<4x256xi32>
    %c0_i32_10 = arith.constant 0 : i32
    %27 = vector.broadcast %c0_i32_10 : i32 to vector<4x256xi32>
    %28 = arith.cmpi sgt, %26, %27 : vector<4x256xi32>
    %c15_i32 = arith.constant 15 : i32
    %29 = vector.broadcast %c15_i32 : i32 to vector<4x256xi32>
    %30 = arith.cmpi slt, %26, %29 : vector<4x256xi32>
    %c0_11 = arith.constant 0 : index
    %c111 = arith.constant 111 : index
    %31 = vector.load %arg5[%c0_11, %c111] : memref<4x512xf32, #tpu.memory_space<vmem>>, vector<4x256xf32>
    %cst_12 = arith.constant 0.000000e+00 : f32
    %32 = vector.broadcast %cst_12 : f32 to vector<4x256xf32>
    %33 = arith.select %28, %31, %32 : vector<4x256xi1>, vector<4x256xf32>
    %c0_13 = arith.constant 0 : index
    %c0_14 = arith.constant 0 : index
    %34 = vector.load %arg6[%c0_13, %c0_14] : memref<40x256xf32, #tpu.memory_space<vmem>>, vector<4x256xf32>
    tpu.vector_store %arg6[%c0_13, %c0_14], %33 {strides = array<i32>} : memref<40x256xf32, #tpu.memory_space<vmem>>, vector<4x256xf32>,
    %c0_15 = arith.constant 0 : index
    %c112 = arith.constant 112 : index
    %35 = vector.load %arg5[%c0_15, %c112] : memref<4x512xf32, #tpu.memory_space<vmem>>, vector<4x256xf32>
    %c4 = arith.constant 4 : index
    %c0_16 = arith.constant 0 : index
    %36 = vector.load %arg6[%c4, %c0_16] : memref<40x256xf32, #tpu.memory_space<vmem>>, vector<4x256xf32>
    tpu.vector_store %arg6[%c4, %c0_16], %35 {strides = array<i32>} : memref<40x256xf32, #tpu.memory_space<vmem>>, vector<4x256xf32>,
    %c0_17 = arith.constant 0 : index
    %c113 = arith.constant 113 : index
    %37 = vector.load %arg5[%c0_17, %c113] : memref<4x512xf32, #tpu.memory_space<vmem>>, vector<4x256xf32>
    %cst_18 = arith.constant 0.000000e+00 : f32
    %38 = vector.broadcast %cst_18 : f32 to vector<4x256xf32>
    %39 = arith.select %30, %37, %38 : vector<4x256xi1>, vector<4x256xf32>
    %c8 = arith.constant 8 : index
    %c0_19 = arith.constant 0 : index
    %40 = vector.load %arg6[%c8, %c0_19] : memref<40x256xf32, #tpu.memory_space<vmem>>, vector<4x256xf32>
    tpu.vector_store %arg6[%c8, %c0_19], %39 {strides = array<i32>} : memref<40x256xf32, #tpu.memory_space<vmem>>, vector<4x256xf32>,
    %c0_20 = arith.constant 0 : index
    %c127 = arith.constant 127 : index
    %41 = vector.load %arg5[%c0_20, %c127] : memref<4x512xf32, #tpu.memory_space<vmem>>, vector<4x256xf32>
    %cst_21 = arith.constant 0.000000e+00 : f32
    %42 = vector.broadcast %cst_21 : f32 to vector<4x256xf32>
    %43 = arith.select %28, %41, %42 : vector<4x256xi1>, vector<4x256xf32>
    %c12 = arith.constant 12 : index
    %c0_22 = arith.constant 0 : index
    %44 = vector.load %arg6[%c12, %c0_22] : memref<40x256xf32, #tpu.memory_space<vmem>>, vector<4x256xf32>
    tpu.vector_store %arg6[%c12, %c0_22], %43 {strides = array<i32>} : memref<40x256xf32, #tpu.memory_space<vmem>>, vector<4x256xf32>,
    %c0_23 = arith.constant 0 : index
    %c128_24 = arith.constant 128 : index
    %45 = vector.load %arg5[%c0_23, %c128_24] : memref<4x512xf32, #tpu.memory_space<vmem>>, vector<4x256xf32>
    %c16 = arith.constant 16 : index
    %c0_25 = arith.constant 0 : index
    %46 = vector.load %arg6[%c16, %c0_25] : memref<40x256xf32, #tpu.memory_space<vmem>>, vector<4x256xf32>
    tpu.vector_store %arg6[%c16, %c0_25], %45 {strides = array<i32>} : memref<40x256xf32, #tpu.memory_space<vmem>>, vector<4x256xf32>,
    %c0_26 = arith.constant 0 : index
    %c129 = arith.constant 129 : index
    %47 = vector.load %arg5[%c0_26, %c129] : memref<4x512xf32, #tpu.memory_space<vmem>>, vector<4x256xf32>
    %cst_27 = arith.constant 0.000000e+00 : f32
    %48 = vector.broadcast %cst_27 : f32 to vector<4x256xf32>
    %49 = arith.select %30, %47, %48 : vector<4x256xi1>, vector<4x256xf32>
    %c20 = arith.constant 20 : index
    %c0_28 = arith.constant 0 : index
    %50 = vector.load %arg6[%c20, %c0_28] : memref<40x256xf32, #tpu.memory_space<vmem>>, vector<4x256xf32>
    tpu.vector_store %arg6[%c20, %c0_28], %49 {strides = array<i32>} : memref<40x256xf32, #tpu.memory_space<vmem>>, vector<4x256xf32>,
    %c0_29 = arith.constant 0 : index
    %c143 = arith.constant 143 : index
    %51 = vector.load %arg5[%c0_29, %c143] : memref<4x512xf32, #tpu.memory_space<vmem>>, vector<4x256xf32>
    %cst_30 = arith.constant 0.000000e+00 : f32
    %52 = vector.broadcast %cst_30 : f32 to vector<4x256xf32>
    %53 = arith.select %28, %51, %52 : vector<4x256xi1>, vector<4x256xf32>
    %c24 = arith.constant 24 : index
    %c0_31 = arith.constant 0 : index
    %54 = vector.load %arg6[%c24, %c0_31] : memref<40x256xf32, #tpu.memory_space<vmem>>, vector<4x256xf32>
    tpu.vector_store %arg6[%c24, %c0_31], %53 {strides = array<i32>} : memref<40x256xf32, #tpu.memory_space<vmem>>, vector<4x256xf32>,
    %c0_32 = arith.constant 0 : index
    %c144 = arith.constant 144 : index
    %55 = vector.load %arg5[%c0_32, %c144] : memref<4x512xf32, #tpu.memory_space<vmem>>, vector<4x256xf32>
    %c28 = arith.constant 28 : index
    %c0_33 = arith.constant 0 : index
    %56 = vector.load %arg6[%c28, %c0_33] : memref<40x256xf32, #tpu.memory_space<vmem>>, vector<4x256xf32>
    tpu.vector_store %arg6[%c28, %c0_33], %55 {strides = array<i32>} : memref<40x256xf32, #tpu.memory_space<vmem>>, vector<4x256xf32>,
    %c0_34 = arith.constant 0 : index
    %c145 = arith.constant 145 : index
    %57 = vector.load %arg5[%c0_34, %c145] : memref<4x512xf32, #tpu.memory_space<vmem>>, vector<4x256xf32>
    %cst_35 = arith.constant 0.000000e+00 : f32
    %58 = vector.broadcast %cst_35 : f32 to vector<4x256xf32>
    %59 = arith.select %30, %57, %58 : vector<4x256xi1>, vector<4x256xf32>
    %c32 = arith.constant 32 : index
    %c0_36 = arith.constant 0 : index
    %60 = vector.load %arg6[%c32, %c0_36] : memref<40x256xf32, #tpu.memory_space<vmem>>, vector<4x256xf32>
    tpu.vector_store %arg6[%c32, %c0_36], %59 {strides = array<i32>} : memref<40x256xf32, #tpu.memory_space<vmem>>, vector<4x256xf32>,
    %c36 = arith.constant 36 : index
    %c0_37 = arith.constant 0 : index
    %61 = vector.load %arg6[%c36, %c0_37] : memref<40x256xf32, #tpu.memory_space<vmem>>, vector<4x256xf32>
    tpu.vector_store %arg6[%c36, %c0_37], %1 {strides = array<i32>} : memref<40x256xf32, #tpu.memory_space<vmem>>, vector<4x256xf32>,
    %c0_38 = arith.constant 0 : index
    %c0_39 = arith.constant 0 : index
    %62 = vector.load %arg2[%c0_38, %c0_39] : memref<8x40xf32, #tpu.memory_space<vmem>>, vector<8x40xf32>
    %c0_40 = arith.constant 0 : index
    %c0_41 = arith.constant 0 : index
    %63 = vector.load %arg6[%c0_40, %c0_41] : memref<40x256xf32, #tpu.memory_space<vmem>>, vector<40x256xf32>
    %cst_42 = arith.constant dense<0.000000e+00> : vector<8x256xf32>
    %64 = tpu.matmul %62, %63, %cst_42 {dimension_numbers = #tpu.dot_dimension_numbers<[1], [0], [0], [1], [0, 0, 1, 1], [], []>} : vector<8x40xf32>, vector<40x256xf32>, vector<8x256xf32> -> vector<8x256xf32>
    %c0_43 = arith.constant 0 : index
    %c0_44 = arith.constant 0 : index
    %65 = vector.load %arg3[%c0_43, %c0_44] : memref<8x1xf32, #tpu.memory_space<vmem>>, vector<8x1xf32>
    %66 = vector.broadcast %65 : vector<8x1xf32> to vector<8x256xf32>
    %67 = arith.addf %64, %66 : vector<8x256xf32>
    %c0_45 = arith.constant 0 : index
    %c0_46 = arith.constant 0 : index
    %c0_47 = arith.constant 0 : index
    %68 = vector.load %arg4[%c0_45, %c0_46, %c0_47] : memref<1x8x256xf32, #tpu.memory_space<vmem>>, vector<1x8x256xf32>
    %69 = vector.shape_cast %68 : vector<1x8x256xf32> to vector<8x256xf32>
    %70 = vector.shape_cast %67 : vector<8x256xf32> to vector<1x8x256xf32>
    tpu.vector_store %arg4[%c0_45, %c0_46, %c0_47], %70 {strides = array<i32>} : memref<1x8x256xf32, #tpu.memory_space<vmem>>, vector<1x8x256xf32>,
    return
  }
  func.func @transform_0(%arg0: i32) -> (i32, i32, i32) {
    %c0_i32 = arith.constant 0 : i32
    %c0_i32_0 = arith.constant 0 : i32
    %c0_i32_1 = arith.constant 0 : i32
    return %arg0, %c0_i32, %c0_i32_0 : i32, i32, i32
  }
  func.func @transform_1(%arg0: i32) -> (i32, i32) {
    %c0_i32 = arith.constant 0 : i32
    %c0_i32_0 = arith.constant 0 : i32
    %c0_i32_1 = arith.constant 0 : i32
    return %c0_i32, %c0_i32_0 : i32, i32
  }
  func.func @transform_2(%arg0: i32) -> (i32, i32) {
    %c0_i32 = arith.constant 0 : i32
    %c0_i32_0 = arith.constant 0 : i32
    %c0_i32_1 = arith.constant 0 : i32
    return %c0_i32, %c0_i32_0 : i32, i32
  }
  func.func @transform_3(%arg0: i32) -> (i32, i32, i32) {
    %c0_i32 = arith.constant 0 : i32
    %c0_i32_0 = arith.constant 0 : i32
    %c0_i32_1 = arith.constant 0 : i32
    return %arg0, %c0_i32, %c0_i32_0 : i32, i32, i32
  }
}

</mosaic_0001>

<bundles_post_ra>
// kernel: tpu_custom_call.1
= control target key start
LH: loop header
LB: loop body
LE: loop exit
PB: predicated region body
PF: predicated region fallthrough
CT: control target
= control target key end

     0   :  { %8 = vsyncpa [#allocation5], 0  ;;  %s1018_s0 = inlined_call_operand.hbm [shape: f32[2,4,256], index: 0, kind: input, shape index: {}]   ;;  %s1019_s1 = inlined_call_operand.vmem [shape: f32[8,40], index: 1, kind: input, shape index: {}]   ;;  %s1020_s2 = inlined_call_operand.vmem [shape: f32[8,1], index: 2, kind: input, shape index: {}]   ;;  %s1021_s3 = inlined_call_operand.hbm [shape: f32[2,8,256], index: 3, kind: output, shape index: {}]  }
   0x1   :  { %10 = vsyncpa [#allocation5 + $0x1], 0 }
   0x2   :  { %11 = vsyncpa [#allocation6], 0 }
   0x3   :  { %13 = vsyncpa [#allocation6 + $0x1], 0  ;;  %s808_s12 = smov 0   ;;  %s810_s13 = smov 0  }
   0x4   :  { %s812_s14 = smov 0   ;;  %s814_s15 = smov 0  }
   0x5 LB: > { %s829_s16 = sadd.s32 4294967295, %s776_s15   ;;  %s605_s17 = sadd.s32 4294967294, %s776_s15   ;;  %s776_s15 = sphi %s814_s15, %s1039_s15   ;;  %s772_s14 = sphi %s812_s14, %s1038_s14   ;;  %s768_s13 = sphi %s810_s13, %s1037_s13   ;;  %s764_s12 = sphi %s808_s12, %s1036_s12  }
   0x6   : > { %s833_s18 = sadd.s32 1, %s776_s15   ;;  %s26_s19 = sadd.s32 1, %s772_s14 }
   0x7   : > { %s23_s20 = ssub.s32 %s776_s15, %s833_s18  ;;  %p33_p0 = scmp.ne.s32.totalorder %s772_s14, %s768_s13 }
   0x8   : > { %p24_p1 = scmp.eq.s32.totalorder %s23_s20, 0  ;;  %p34_p2 = scmp.eq.s32.totalorder %s776_s15, 0 }
   0x9   : > { %p39_p3 = scmp.ne.s32.totalorder %s768_s13, %s764_s12  ;;  %p40_p4 = scmp.eq.s32.totalorder %s829_s16, 0 }
   0xa   : > { %s845_s21 = scalar_select %p24_p1, %s772_s14, %s26_s19  }
   0xb   : > { %p847_p5 = por %p34_p2, %p33_p0  ;;  %p851_p6 = por %p40_p4, %p39_p3 }
   0xc   : > { %p105_p7 = scmp.eq.s32.totalorder %s829_s16, 1  ;;  %p111_p8 = scmp.eq.s32.totalorder %s605_s17, 1 }
   0xd   : > { %p635_p10 = scmp.lt.s32.totalorder %s776_s15, 2  ;;  %s137_s26 = sand.u32 1, %s772_s14  }
   0xe   : > { %p858_p11 = por %p105_p7, %p33_p0  ;;  %p862_p12 = por %p111_p8, %p39_p3 }
   0xf   : > { %s621_s27 = sshll.u32 %s776_s15, 3  ;;  %s608_s28 = sshll.u32 %s137_s26, 3 }
  0x10   : > { %s146_s4 = scalar_lea.hbm %s1018_s0, %s621_s27  ;;  %s141_s6 = scalar_lea.vmem [#allocation4], %s608_s28 }
  0x11   : > { %s148_s5 = sshll.u32 %s146_s4, 4  ;;  %s150_s7 = sshll.u32 %s141_s6, 4  ;;  %s149_s5 = int_to_ptr.hbm [resolvable:$true] %s148_s5  ;;  %s151_s7 = int_to_ptr.vmem [resolvable:$true] %s150_s7 }
  0x12   : > { %p873_p13 = pnand %p635_p10, %p847_p5  ;;  %p611_p0 = scmp.ge.s32.totalorder %s776_s15, 1 }
  0x13   : > { %p155_p1 = scmp.lt.s32.totalorder %s776_s15, 3  ;;  %s138_s9 = scalar_lea.sflag [#allocation5], %s137_s26 }
  0x14   : > { %s680_s10 = sshra.s32 %s149_s5, 4  ;;  %p684_p3 = pneg %p873_p13  ;;  %s681_s10 = int_to_ptr.hbm [resolvable:$true] %s680_s10 }
  0x15   : > { %s682_s11 = scalar_lea.hbm %s681_s10, 8  ;;  %s687_s20 = scalar_lea.hbm %s1018_s0, 16 }
  0x16   : > { %p683_p2 = scmp.ne.s32.totalorder %s681_s10, %s682_s11  ;;  %p688_p5 = scmp.lt.s32.totalorder %s681_s10, %s1018_s0 }
  0x17   : > { %p689_p8 = scmp.lt.s32.totalorder %s687_s20, %s682_s11 }
  0x18   : > { %p685_p4 = pnand %p684_p3, %p683_p2 }
  0x19   : > { %p690_p10 = por %p689_p8, %p688_p5 }
  0x1a   : > { %p686_p7 = pneg %p685_p4 }
  0x1c   : > { %p691_p9 = pnand %p690_p10, %p686_p7 }
  0x1e   : > { %694 = shalt.err (!%p691_p9)
}
  0x1f   : > { %630 = dma.hbm_to_vmem [thread:$0]  (!%p873_p13), %s149_s5, 128, %s151_s7, %s138_s9  }
  0x20   : > { %p156_p2 = pnand %p611_p0, %p155_p1 }
  0x21   : > { %s894_s26 = sand.u32 (!%p156_p2), 1, %s768_s13  }
  0x22   : > { %159 = sbr.rel (%p156_p2) target bundleno = 406 (0x196), region = 32  ;;  %s612_s28 = sshll.u32 (!%p156_p2), %s894_s26, 3 }
  0x23   : > { %s162_s29 = scalar_lea.sflag (!%p156_p2), [#allocation5], %s894_s26  ;;  %s165_s30 = scalar_lea.vmem (!%p156_p2), [#allocation4], %s612_s28 }
  0x27   : > { %755 = dma.done.wait (%p851_p6), %s162_s29, 128  }
  0x28   : > { %757 = vsyncadd (%p851_p6), %s162_s29, 4294967168  ;;  %v778_v0 = vmov 0.0   ;;  %v902_v1 = vld [vmem:[%s165_s30] sm:$0xff]  ;;  %s779_s23 = smov 15   ;;  %s780_s4 = smov 1   ;;  %v196_v40 = vlaneseq  ;;  %vm292_vm1 = vcmask 121856  }
  0x29   : > { %193 = vst [vmem:[#allocation2] sm:$0xff] %v778_v0  ;;  %vm190_vm0 = vcmp.gt.f32.partialorder %v902_v1, 0.0  ;;  %v191_v2 = vmul.f32 0.2, %v902_v1  ;;  %s781_s5 = smov 127   ;;  %s782_s6 = smov 113  }
  0x2a   : > { %194 = vst [vmem:[#allocation2 + $0x8] sm:$0xff] %v778_v0  ;;  %s783_s7 = smov 112   ;;  %s784_s8 = smov 111   ;;  %v197_v42 = vand.u32 127, %v196_v40  ;;  %vm357_vm4 = vcmask 1039360   ;;  %vm317_vm5 = vcmask 7168  }
  0x2b   : > { %v907_v3 = vsel %vm190_vm0, %v902_v1, %v191_v2  ;;  %s785_s9 = smov 17   ;;  %s786_s10 = smov 16   ;;  %vm388_vm8 = vcmask 924672   ;;  %vm414_vm9 = vcmask 916480   ;;  %vm437_vm10 = vcmask 908288  }
  0x2c   : > { %195 = vst [vmem:[#allocation2 + $0x4] sm:$0xff] %v907_v3  ;;  %v198_v43 = vadd.s32 128, %v197_v42  ;;  %v203_v46 = vand.u32 15, %v197_v42  ;;  %vm243_vm11 = vcmask 138240   ;;  %vm269_vm12 = vcmask 130048   ;;  %s613_s22 = sshll.u32 %s894_s26, 4 }
  0x2d   : > { %vm472_vm13 = vcmask 326656   ;;  %s622_s27 = sshll.u32 %s829_s16, 4 }
  0x2e   : > { %v210_v45 = vand.u32 15, %v198_v43  ;;  %vm938_vm3 = vcmp.lt.s32.totalorder %v203_v46, 15  ;;  %vm953_vm7 = vcmp.gt.s32.totalorder %v203_v46, 0  ;;  %s530_s30 = scalar_lea.hbm %s1021_s3, %s622_s27 }
  0x30   : > { %vm934_vm2 = vcmp.lt.s32.totalorder %v210_v45, 15  ;;  %vm949_vm6 = vcmp.gt.s32.totalorder %v210_v45, 0 }
  0x31   : > { %v342_v18 = vld [vmem:[#allocation2 + $0xc] sm:$0xf] }
  0x32   : > { %v373_v22 = vld [vmem:[#allocation2 + $0xc] sm:$0xf] }
  0x33   : > { %v227_v4 = vld [vmem:[#allocation2] sm:$0xff]  ;;  %v228_v5 = vld [vmem:[#allocation2 + $0x8] sm:$0xf]  ;;  %v398_v26 = vld [vmem:[#allocation2 + $0xc] sm:$0xf] }
  0x34   : > { %231 = vst [vmem:[#allocation1] ss:$2 sm:$0xff] %v227_v4  ;;  %v253_v6 = vld [vmem:[#allocation2 + $0x8] sm:$0xf]  ;;  %v422_v30 = vld [vmem:[#allocation2 + $0xc] sm:$0xf] }
  0x35   : > { %233 = vst [vmem:[#allocation1 + $0x10] ss:$2 sm:$0xff] %v228_v5  ;;  %v277_v10 = vld [vmem:[#allocation2 + $0x8] sm:$0xf] }
  0x36   : > { %v302_v14 = vld [vmem:[#allocation2 + $0x8] sm:$0xf] }
  0x3b   : > { %v910_v7 = vld.sshfl [vmem:[#allocation1] sm:$0xff pattern:$0x75316420]  ;;  %v912_v8 = vld.sshfl [vmem:[#allocation1 + $0x8] sm:$0xff pattern:$0x75316420] }
  0x3c   : > { %257 = vst [vmem:[#allocation1 + $0x1] ss:$2 sm:$0xff] %v227_v4  ;;  %v914_v9 = vld.sshfl [vmem:[#allocation1 + $0x10] sm:$0xff pattern:$0x75316420] }
  0x3d   : > { %259 = vst [vmem:[#allocation1 + $0x11] ss:$2 sm:$0xff] %v253_v6 }
  0x43   : > { %v916_v11 = vld.sshfl [vmem:[#allocation1] sm:$0xff pattern:$0x75316420]  ;;  %v918_v12 = vld.sshfl [vmem:[#allocation1 + $0x8] sm:$0xff pattern:$0x75316420] }
  0x44   : > { %280 = vst [vmem:[#allocation1] ss:$2 sm:$0xff] %v227_v4  ;;  %v920_v13 = vld.sshfl [vmem:[#allocation1 + $0x10] sm:$0xff pattern:$0x75316420] }
  0x45   : > { %282 = vst [vmem:[#allocation1 + $0x10] ss:$2 sm:$0xff] %v277_v10 }
  0x4b   : > { %v284_v15 = vld.sshfl [vmem:[#allocation1 + $0x8] sm:$0xff pattern:$0x75316420]  ;;  %v283_v16 = vld.sshfl [vmem:[#allocation1] sm:$0xff pattern:$0x75316420] }
  0x4c   : > { %288 = vrot.lane.b32.xlu1 %v284_v15, %s779_s23  ;;  %286 = vrot.lane.b32.xlu0 %v283_v16, %s779_s23  ;;  %305 = vst [vmem:[#allocation1] ss:$2 sm:$0xff] %v227_v4  ;;  %v285_v17 = vld.sshfl [vmem:[#allocation1 + $0x10] sm:$0xff pattern:$0x75316420] }
  0x4d   : > { %290 = vrot.lane.b32.xlu2 %v285_v17, %s779_s23  ;;  %307 = vst [vmem:[#allocation1 + $0x10] ss:$2 sm:$0xff] %v302_v14  ;;  %s188_s23 = scalar_lea.vmem [#allocation7], %s613_s22 }
  0x53   : > { %v309_v19 = vld.sshfl [vmem:[#allocation1 + $0x8] sm:$0xff pattern:$0x75316420]  ;;  %v308_v20 = vld.sshfl [vmem:[#allocation1] sm:$0xff pattern:$0x75316420] }
  0x54   : > { %313 = vrot.lane.b32.xlu1 %v309_v19, %s780_s4  ;;  %311 = vrot.lane.b32.xlu0 %v308_v20, %s780_s4  ;;  %334 = vst [vmem:[#allocation1] ss:$2 sm:$0xff] %v907_v3  ;;  %v310_v21 = vld.sshfl [vmem:[#allocation1 + $0x10] sm:$0xff pattern:$0x75316420] }
  0x55   : > { %315 = vrot.lane.b32.xlu2 %v310_v21, %s780_s4  ;;  %347 = vst [vmem:[#allocation1 + $0x10] ss:$2 sm:$0xff] %v342_v18  ;;  %s532_s4 = sshll.u32 %s188_s23, 4  ;;  %s533_s4 = int_to_ptr.vmem [resolvable:$true] %s532_s4 }
  0x5b   : > { %v335_v23 = vld.sshfl [vmem:[#allocation1] sm:$0xff pattern:$0x75316420]  ;;  %v336_v24 = vld.sshfl [vmem:[#allocation1 + $0x8] sm:$0xff pattern:$0x75316420] }
  0x5c   : > { %339 = vst [vmem:[#allocation3 + $0x48] sm:$0xf] %v335_v23  ;;  %v350_v25 = vld.sshfl [vmem:[#allocation1 + $0x10] sm:$0xff pattern:$0x75316420] }
  0x5d   : > { %340 = vst [vmem:[#allocation3 + $0x28] sm:$0xf] %v336_v24  ;;  %355 = vrot.lane.b32.xlu2 %v350_v25, %s781_s5  ;;  %v466_v25 = vld [vmem:[%s1020_s2] sm:$0xff] }
  0x5e   : > { %345 = vst [vmem:[#allocation1] ss:$2 sm:$0xff] %v907_v3 }
  0x5f   : > { %378 = vst [vmem:[#allocation1 + $0x10] ss:$2 sm:$0xff] %v373_v22 }
  0x65   : > { %v348_v27 = vld.sshfl [vmem:[#allocation1] sm:$0xff pattern:$0x75316420]  ;;  %v349_v28 = vld.sshfl [vmem:[#allocation1 + $0x8] sm:$0xff pattern:$0x75316420] }
  0x66   : > { %351 = vrot.lane.b32.xlu1 %v348_v27, %s781_s5  ;;  %376 = vst [vmem:[#allocation1] ss:$2 sm:$0xff] %v907_v3  ;;  %v381_v29 = vld.sshfl [vmem:[#allocation1 + $0x10] sm:$0xff pattern:$0x75316420]  ;;  %353 = vrot.lane.b32.xlu2 %v349_v28, %s781_s5  ;;  %s534_s5 = sshll.u32 %s530_s30, 4  ;;  %s535_s5 = int_to_ptr.hbm [resolvable:$true] %s534_s5 }
  0x67   : > { %404 = vst [vmem:[#allocation1 + $0x11] ss:$2 sm:$0xff] %v398_v26  ;;  %v787_v26 = vmov 0  }
  0x68   : > { %679 = vset.pattern.permute.xlu0 %v787_v26 }
  0x6d   : > { %v380_v31 = vld.sshfl [vmem:[#allocation1 + $0x8] sm:$0xff pattern:$0x75316420]  ;;  %v379_v32 = vld.sshfl [vmem:[#allocation1] sm:$0xff pattern:$0x75316420] }
  0x6e   : > { %384 = vrot.lane.b32.xlu1 %v380_v31, %s782_s6  ;;  %382 = vrot.lane.b32.xlu0 %v379_v32, %s782_s6  ;;  %v407_v33 = vld.sshfl [vmem:[#allocation1 + $0x10] sm:$0xff pattern:$0x75316420]  ;;  %402 = vst [vmem:[#allocation1 + $0x1] ss:$2 sm:$0xff] %v907_v3 }
  0x6f   : > { %427 = vst [vmem:[#allocation1 + $0x10] ss:$2 sm:$0xff] %v422_v30  ;;  %386 = vrot.lane.b32.xlu2 %v381_v29, %s782_s6  ;;  %s519_s6 = scalar_lea.sflag [#allocation6], %s894_s26 }
  0x75   : > { %v405_v34 = vld.sshfl [vmem:[#allocation1] sm:$0xff pattern:$0x75316420]  ;;  %v406_v35 = vld.sshfl [vmem:[#allocation1 + $0x8] sm:$0xff pattern:$0x75316420] }
  0x76   : > { %v430_v36 = vld.sshfl [vmem:[#allocation1 + $0x10] sm:$0xff pattern:$0x75316420]  ;;  %408 = vrot.lane.b32.xlu0 %v405_v34, %s783_s7  ;;  %425 = vst [vmem:[#allocation1] ss:$2 sm:$0xff] %v907_v3 }
  0x77   : > { %435 = vrot.lane.b32.xlu1 %v430_v36, %s784_s8  ;;  %412 = vrot.lane.b32.xlu2 %v407_v33, %s783_s7 }
  0x7d   : > { %v428_v37 = vld.sshfl [vmem:[#allocation1] sm:$0xff pattern:$0x75316420]  ;;  %v429_v38 = vld.sshfl [vmem:[#allocation1 + $0x8] sm:$0xff pattern:$0x75316420] }
  0x7e   : > { %431 = vrot.lane.b32.xlu0 %v428_v37, %s784_s8  ;;  %448 = vst [vmem:[#allocation1 + $0x1] ss:$2 sm:$0xff] %v902_v1 }
  0x7f   : > { %410 = vrot.lane.b32.xlu1 %v406_v35, %s783_s7  ;;  %241 = vrot.lane.b32.xlu2 %v914_v9, %s785_s9  ;;  %s724_s7 = sshra.s32 %s535_s5, 4  ;;  %s725_s7 = int_to_ptr.hbm [resolvable:$true] %s724_s7 }
  0x80   : > { %s726_s16 = scalar_lea.hbm %s725_s7, 16  ;;  %p731_p0 = scmp.lt.s32.totalorder %s725_s7, %s1021_s3 }
  0x81   : > { %p727_p6 = scmp.ne.s32.totalorder %s725_s7, %s726_s16 }
  0x83   : > { %p728_p9 = pnand %p727_p6, %p858_p11 }
  0x85   : > { %v449_v9 = vld.sshfl [vmem:[#allocation1] sm:$0xff pattern:$0x75316420]  ;;  %v450_v10 = vld.sshfl [vmem:[#allocation1 + $0x8] sm:$0xff pattern:$0x75316420]  ;;  %p729_p13 = pneg %p728_p9 }
  0x86   : > { %433 = vrot.lane.b32.xlu0 %v429_v38, %s784_s8  ;;  %453 = vst [vmem:[#allocation3 + $0x40] sm:$0xf0] %v449_v9 }
  0x87   : > { %239 = vrot.lane.b32.xlu1 %v912_v8, %s785_s9  ;;  %267 = vrot.lane.b32.xlu2 %v920_v13, %s786_s10  ;;  %454 = vst [vmem:[#allocation3 + $0x38] sm:$0xf0] %v450_v10 }
  0x8e   : > { %237 = vrot.lane.b32.xlu0 %v910_v7, %s785_s9 }
  0x8f   : > { %265 = vrot.lane.b32.xlu1 %v918_v12, %s786_s10 }
  0x96   : > { %263 = vrot.lane.b32.xlu0 %v916_v11, %s786_s10  ;;  %s730_s10 = scalar_lea.hbm %s1021_s3, 32 }
  0x97   : > { %p732_p1 = scmp.lt.s32.totalorder %s730_s10, %s726_s16 }
  0x99   : > { %p733_p3 = por %p732_p1, %p731_p0 }
  0x9b   : > { %p734_p4 = pnand %p733_p3, %p729_p13 }
  0x9e   : > { %469 = vperm.xlu0 %679, %v466_v25  }
  0xa7   : > { %v291_v39 = vpop.permute.xlu2 %290 }
  0xaf   : > { %v316_v41 = vpop.permute.xlu2 %315 }
  0xb7   : > { %v356_v44 = vpop.permute.xlu2 %355 }
  0xbe   : > { %v289_v49 = vpop.permute.xlu1 %288  ;;  %v287_v50 = vpop.permute.xlu0 %286 }
  0xbf   : > { %v294_v51 = vsel %vm292_vm1, %v289_v49, %v291_v39  ;;  %v293_v52 = vsel %vm292_vm1, %v287_v50, %v289_v49 }
  0xc0   : > { %v298_v53 = vsel %vm934_vm2, %v294_v51, 0.0  ;;  %v297_v54 = vsel %vm938_vm3, %v293_v52, 0.0  ;;  %v354_v55 = vpop.permute.xlu2 %353  ;;  %v455_v52 = vld [vmem:[%s1019_s1] sm:$0xff] }
  0xc1   : > { %300 = vst [vmem:[#allocation3 + $0x10] sm:$0xf] %v298_v53  ;;  %v359_v56 = vsel %vm357_vm4, %v354_v55, %v356_v44 }
  0xc2   : > { %299 = vst [vmem:[#allocation3 + $0x18] sm:$0xf] %v297_v54  ;;  %v363_v57 = vsel %vm934_vm2, %v359_v56, 0.0 }
  0xc3   : > { %v367_v58 = vrot.slane %v363_v57, 4 }
  0xc5   : > { %371 = vst [vmem:[#allocation3 + $0x28] sm:$0xf0] %v367_v58 }
  0xc6   : > { %v314_v61 = vpop.permute.xlu1 %313  ;;  %v312_v62 = vpop.permute.xlu0 %311 }
  0xc7   : > { %v319_v63 = vsel %vm317_vm5, %v314_v61, %v316_v41  ;;  %v318_v0 = vsel %vm317_vm5, %v312_v62, %v314_v61 }
  0xc8   : > { %v323_v1 = vsel %vm949_vm6, %v319_v63, 0.0  ;;  %v322_v2 = vsel %vm953_vm7, %v318_v0, 0.0 }
  0xc9   : > { %v327_v3 = vrot.slane %v323_v1, 4  ;;  %v326_v4 = vrot.slane %v322_v2, 4  ;;  %v387_v11 = vpop.permute.xlu2 %386 }
  0xcb   : > { %331 = vst [vmem:[#allocation3 + $0x10] sm:$0xf0] %v327_v3 }
  0xcc   : > { %330 = vst [vmem:[#allocation3 + $0x18] sm:$0xf0] %v326_v4  ;;  %v461_v47 = vld [vmem:[#allocation3 + $0x28] sm:$0xff] }
  0xd1   : > { %v413_v20 = vpop.permute.xlu2 %412 }
  0xd2   : > { %v459_v51 = vld [vmem:[#allocation3 + $0x10] sm:$0xff] }
  0xd3   : > { %v458_v49 = vld [vmem:[#allocation3 + $0x18] sm:$0xff] }
  0xd8   : > { %v352_v5 = vpop.permute.xlu1 %351 }
  0xd9   : > { %v358_v6 = vsel %vm357_vm4, %v352_v5, %v354_v55  ;;  %v242_v27 = vpop.permute.xlu2 %241 }
  0xda   : > { %v362_v7 = vsel %vm938_vm3, %v358_v6, 0.0 }
  0xdb   : > { %v366_v8 = vrot.slane %v362_v7, 4 }
  0xdd   : > { %370 = vst [vmem:[#allocation3 + $0x48] sm:$0xf0] %v366_v8 }
  0xe0   : > { %v385_v12 = vpop.permute.xlu1 %384  ;;  %v383_v13 = vpop.permute.xlu0 %382 }
  0xe1   : > { %v389_v14 = vsel %vm388_vm8, %v383_v13, %v385_v12  ;;  %v390_v15 = vsel %vm388_vm8, %v385_v12, %v387_v11  ;;  %v268_v36 = vpop.permute.xlu2 %267 }
  0xe2   : > { %v393_v16 = vsel %vm953_vm7, %v389_v14, 0.0  ;;  %v394_v17 = vsel %vm949_vm6, %v390_v15, 0.0 }
  0xe3   : > { %395 = vst [vmem:[#allocation3 + $0x8] sm:$0xf] %v393_v16 }
  0xe4   : > { %396 = vst [vmem:[#allocation3 + $0x20] sm:$0xf] %v394_v17  ;;  %v460_v46 = vld [vmem:[#allocation3 + $0x48] sm:$0xff] }
  0xe8   : > { %v409_v18 = vpop.permute.xlu0 %408 }
  0xe9   : > { %v436_v19 = vpop.permute.xlu1 %435 }
  0xf0   : > { %v432_v21 = vpop.permute.xlu0 %431 }
  0xf1   : > { %v411_v22 = vpop.permute.xlu1 %410 }
  0xf2   : > { %v415_v23 = vsel %vm414_vm9, %v409_v18, %v411_v22  ;;  %v416_v24 = vsel %vm414_vm9, %v411_v22, %v413_v20 }
  0xf3   : > { %419 = vst [vmem:[#allocation3 + $0x8] sm:$0xf0] %v415_v23 }
  0xf4   : > { %420 = vst [vmem:[#allocation3 + $0x20] sm:$0xf0] %v416_v24 }
  0xf8   : > { %v434_v28 = vpop.permute.xlu0 %433 }
  0xf9   : > { %v438_v29 = vsel %vm437_vm10, %v432_v21, %v434_v28  ;;  %v439_v30 = vsel %vm437_vm10, %v434_v28, %v436_v19  ;;  %v240_v31 = vpop.permute.xlu1 %239 }
  0xfa   : > { %v442_v32 = vsel %vm938_vm3, %v438_v29, 0.0  ;;  %v443_v33 = vsel %vm934_vm2, %v439_v30, 0.0  ;;  %v245_v34 = vsel %vm243_vm11, %v240_v31, %v242_v27  ;;  %v462_v44 = vld [vmem:[#allocation3 + $0x8] sm:$0xff] }
  0xfb   : > { %444 = vst [vmem:[#allocation3 + $0x40] sm:$0xf] %v442_v32  ;;  %v249_v35 = vsel %vm949_vm6, %v245_v34, 0.0  ;;  %v463_v45 = vld [vmem:[#allocation3 + $0x20] sm:$0xff] }
  0xfc   : > { %445 = vst [vmem:[#allocation3 + $0x38] sm:$0xf] %v443_v33 }
  0xfd   : > { %251 = vst [vmem:[#allocation3] sm:$0xf] %v249_v35 }
 0x100   : > { %v238_v37 = vpop.permute.xlu0 %237 }
 0x101   : > { %v244_v38 = vsel %vm243_vm11, %v238_v37, %v240_v31  ;;  %v266_v39 = vpop.permute.xlu1 %265 }
 0x102   : > { %v248_v40 = vsel %vm953_vm7, %v244_v38, 0.0  ;;  %v271_v41 = vsel %vm269_vm12, %v266_v39, %v268_v36  ;;  %v464_v42 = vld [vmem:[#allocation3 + $0x40] sm:$0xff] }
 0x103   : > { %250 = vst [vmem:[#allocation3 + $0x30] sm:$0xf] %v248_v40  ;;  %487 = vmatpush.msra.mxu0 %v464_v42  ;;  %v465_v43 = vld [vmem:[#allocation3 + $0x38] sm:$0xff] }
 0x104   : > { %275 = vst [vmem:[#allocation3] sm:$0xf0] %v271_v41  ;;  %507 = vmatpush.msra.mxu1 %v465_v43 }
 0x105   : > { %488 = vmatpush.msra.mxu0 %v462_v44 }
 0x106   : > { %508 = vmatpush.msra.mxu1 %v463_v45 }
 0x107   : > { %489 = vmatpush.msra.mxu0 %v460_v46 }
 0x108   : > { %509 = vmatpush.msra.mxu1 %v461_v47  ;;  %v264_v48 = vpop.permute.xlu0 %263 }
 0x109   : > { %v270_v50 = vsel %vm269_vm12, %v264_v48, %v266_v39  ;;  %490 = vmatpush.msra.mxu0 %v458_v49 }
 0x10a   : > { %274 = vst [vmem:[#allocation3 + $0x30] sm:$0xf0] %v270_v50  ;;  %510 = vmatpush.msra.mxu1 %v459_v51 }
 0x10b   : > { %v457_v53 = vld [vmem:[#allocation3] sm:$0xff] }
 0x10c   : > { %511 = vmatpush.msra.mxu1 %v457_v53 }
 0x10d   : > { %615 = vmatmul.msk.f32.vlgmr.msra.gmra.mxu1 %vm472_vm13, %v455_v52 }
 0x110   : > { %v470_v55 = vpop.permute.xlu0 %469 }
 0x111   : > { %v456_v54 = vld [vmem:[#allocation3 + $0x30] sm:$0xff] }
 0x112   : > { %491 = vmatpush.msra.mxu0 %v456_v54 }
 0x113   : > { %614 = vmatmul.msk.f32.vlgmr.msra.gmra.mxu0 %vm472_vm13, %v455_v52 }
 0x18a   : > { %v513_v56 = vpop.f32.mrf.mxu1 }
 0x18b   : > { %v514_v57 = vadd.f32 %v513_v56, %v470_v55 }
 0x18d   : > { %517 = vst [vmem:[%s188_s23 + $0x8] sm:$0xff] %v514_v57 }
 0x190   : > { %v493_v58 = vpop.f32.mrf.mxu0 }
 0x191   : > { %v494_v59 = vadd.f32 %v493_v58, %v470_v55 }
 0x193   : > { %516 = vst [vmem:[%s188_s23] sm:$0xff] %v494_v59 }
 0x194   : > { %737 = shalt.err (!%p734_p4)
}
 0x195   : > { %625 = dma.vmem_to_hbm [thread:$0]  (%p858_p11), %s533_s4, 256, %s535_s5, %s519_s6  }
 0x196 PF: > { %s546_s26 = sand.u32 1, %s764_s12   ;;  %p1035_p7 = scmp.ge.s32.totalorder %s776_s15, 2 }
 0x197   : > { %s547_s19 = scalar_lea.sflag [#allocation6], %s546_s26 }
 0x198   : > { %p632_p5 = pnand %p1035_p7, %p862_p12 }
 0x19a   : > { %p633_p8 = pneg %p632_p5 }
 0x19c   : > { %759 = dma.done.wait (%p633_p8), %s547_s19, 256  }
 0x19d   : > { %761 = vsyncadd (%p633_p8), %s547_s19, 4294967040  ;;  %p16_p10 = scmp.ge.s32.totalorder %s833_s18, 4   ;;  %s1036_s12 = smov %s768_s13 }
 0x19e   : > { %s1037_s13 = smov %s772_s14  ;;  %s1038_s14 = smov %s845_s21 }
 0x19f   : > { %s1039_s15 = smov %s833_s18  ;;  %18 = sbr.rel (!%p16_p10) target bundleno = 5 (0x5), region = 88 }
 0x1a4   :  { %553 = vsyncpa [#allocation5], 1 }
 0x1a5   :  { %555 = vsyncpa [#allocation5 + $0x1], 1 }
 0x1a6   :  { %556 = vsyncpa [#allocation6], 1 }
 0x1a7   :  { %558 = vsyncpa [#allocation6 + $0x1], 1 }

</bundles_post_ra>
